<compile_context>
chip_gen: v7x
topology: tpu7x:2x2x1
jax: 0.10.0
libtpu: 0.0.40
codegen_flags: <defaults>
</compile_context>

<pallas_src>
import jax
import jax.numpy as jnp
from jax.experimental import pallas as pl
from jax.experimental.pallas import tpu as pltpu

NUM_HEADS = 8


def _round_up(x, m):
    return (x + m - 1) // m * m


# --------------------------------------------------------------------------- #
# Kernel: a single GEMM  out = cast(x) @ W_comb + b_comb
# --------------------------------------------------------------------------- #
def fuse_kernel(x_ref, w_ref, b_ref, out_ref):
    x = x_ref[...].astype(w_ref.dtype)          # in-kernel cast (VPU), no HBM copy
    acc = jnp.dot(x, w_ref[...], preferred_element_type=jnp.float32)
    out_ref[...] = (acc + b_ref[...]).astype(out_ref.dtype)


# --------------------------------------------------------------------------- #
# Offline parameter folding
# --------------------------------------------------------------------------- #
def fold_params(params, compute_dtype=jnp.bfloat16):
    """Fold the entire linear chain offline (exact up to f32 reassociation).

    seq_q = seq_k = 1  =>  softmax over one key == 1  =>  attention output is
    exactly the value projection of kg_emb, so
        out = ((kg @ W_v + b_v) @ W_o + b_o) @ W_fc + b_fc
            =  kg @ (W_v W_o W_fc) + (b_v W_o W_fc + b_o W_fc + b_fc)
    """
    w_of = params["w_o"] @ params["w_fc"]                       # (D, H)
    w_comb = params["w_v"] @ w_of                               # (D, H)
    b_comb = (params["b_v"] @ w_of
              + params["b_o"] @ params["w_fc"]
              + params["b_fc"])                                 # (1, H)

    H = w_comb.shape[1]
    H_pad = _round_up(H, 128)       # lane-dense output stores, MXU-friendly N
    if H_pad != H:
        w_comb = jnp.pad(w_comb, ((0, 0), (0, H_pad - H)))
        b_comb = jnp.pad(b_comb, ((0, 0), (0, H_pad - H)))

    return {
        "w": w_comb.astype(compute_dtype),      # (D, H_pad)
        "b": b_comb.astype(jnp.float32),        # (1, H_pad), f32 bias add
        "out_features": H,
    }


# --------------------------------------------------------------------------- #
# Wrapper
# --------------------------------------------------------------------------- #
def _vmem_needed(bt, ht, D, in_itm, w_itm, out_itm):
    # Conservative: assume everything double-buffered.
    return (2 * bt * D * in_itm        # activation tile
            + 2 * D * ht * w_itm       # weight tile
            + 2 * ht * 4               # bias tile
            + 2 * bt * ht * out_itm)   # output tile


def fuse_forward(gene, kg, folded, *, batch_tile=None, h_tile=None,
                 out_dtype=jnp.float32):
    """Pallas forward pass of FuseModel.

    NOTE: assumes seq_q = seq_k = 1 (the 2-D -> unsqueeze(1) path of
    FuseModel.forward).  In that regime the softmax over a single key is
    exactly 1, so gene_emb does not influence the output; it is accepted for
    API parity but never DMA'd into the kernel.
    """
    # TODO(synk): generalize to 3-D (seq_len > 1) inputs, which would need the
    # full Q/K/softmax path; this kernel only covers the 2-D path of the spec.
    assert gene.ndim == 2 and kg.ndim == 2, "kernel assumes seq_q = seq_k = 1"
    assert gene.shape == kg.shape

    B, D = kg.shape
    w, b = folded["w"], folded["b"]
    H = folded["out_features"]
    H_pad = w.shape[1]
    assert w.shape[0] == D

    in_itm = jnp.dtype(kg.dtype).itemsize
    w_itm = jnp.dtype(w.dtype).itemsize
    out_itm = jnp.dtype(out_dtype).itemsize

    # VMEM budget (v5e/v6e: 128 MiB, v7x: 64 MiB) with headroom.
    try:
        vmem_cap = int(pltpu.get_tpu_info().vmem_capacity_bytes)
    except Exception:
        vmem_cap = 64 << 20
    budget = max(vmem_cap - (8 << 20), 16 << 20)

    # ---- tile selection --------------------------------------------------- #
    if batch_tile is None:
        bt = min(512, _round_up(B, 8))
        if B >= 64:
            # >= 2 grid steps along batch so v7x's two TensorCores both work;
            # the extra grid step costs ~0.35us on v5e/v6e (negligible).
            bt = min(bt, max(16, _round_up(pl.cdiv(B, 2), 16)))
    else:
        bt = max(8, _round_up(batch_tile, 8))

    if h_tile is None:
        ht = min(H_pad, 4096)
    else:
        ht = min(H_pad, max(128, _round_up(h_tile, 128)))

    # Shrink tiles if the resident blocks would exceed the VMEM budget.
    while _vmem_needed(bt, ht, D, in_itm, w_itm, out_itm) > budget and ht > 512:
        ht = max(512, (ht // 2) // 128 * 128)
    while _vmem_needed(bt, ht, D, in_itm, w_itm, out_itm) > budget and bt > 64:
        bt = max(64, (bt // 2) // 8 * 8)

    needed = _vmem_needed(bt, ht, D, in_itm, w_itm, out_itm)
    vmem_limit = int(min(budget, max(needed + (4 << 20), 16 << 20)))

    grid = (pl.cdiv(B, bt), pl.cdiv(H_pad, ht))

    x_spec = pl.BlockSpec((bt, D), lambda i, j: (i, 0))
    w_spec = pl.BlockSpec((D, ht), lambda i, j: (0, j))
    b_spec = pl.BlockSpec((1, ht), lambda i, j: (0, j))
    out_spec = pl.BlockSpec((bt, ht), lambda i, j: (i, j))

    out = pl.pallas_call(
        fuse_kernel,
        out_shape=jax.ShapeDtypeStruct((B, H_pad), out_dtype),
        grid_spec=pltpu.PrefetchScalarGridSpec(
            num_scalar_prefetch=0,
            grid=grid,
            in_specs=[x_spec, w_spec, b_spec],
            out_specs=out_spec,
        ),
        compiler_params=pltpu.CompilerParams(
            dimension_semantics=("parallel", "parallel"),
            vmem_limit_bytes=vmem_limit),
    )(kg, w, b)

    return out if H == H_pad else out[:, :H]


# --------------------------------------------------------------------------- #
# Parameters & pure-JAX reference (full MHA math, f32)
# --------------------------------------------------------------------------- #
def init_params(key, input_dim, hidden_dim):
    assert input_dim % NUM_HEADS == 0
    ks = jax.random.split(key, 10)
    scale = 0.02

    def w(k, shape):
        return (scale * jax.random.normal(k, shape)).astype(jnp.float32)

    return {
        "w_q": w(ks[0], (input_dim, input_dim)),
        "w_k": w(ks[1], (input_dim, input_dim)),
        "w_v": w(ks[2], (input_dim, input_dim)),
        "b_q": w(ks[3], (1, input_dim)),
        "b_k": w(ks[4], (1, input_dim)),
        "b_v": w(ks[5], (1, input_dim)),
        "w_o": w(ks[6], (input_dim, input_dim)),
        "b_o": w(ks[7], (1, input_dim)),
        "w_fc": w(ks[8], (input_dim, hidden_dim)),
        "b_fc": w(ks[9], (1, hidden_dim)),
    }


def reference_forward(gene, kg, p):
    """Pure-JAX reference mirroring PyTorch MHA (seq_q = seq_k = 1) + Linear."""
    hi = jax.lax.Precision.HIGHEST
    q = jnp.dot(gene, p["w_q"], precision=hi) + p["b_q"]
    k = jnp.dot(kg, p["w_k"], precision=hi) + p["b_k"]
    v = jnp.dot(kg, p["w_v"], precision=hi) + p["b_v"]

    B, D = q.shape
    hd = D // NUM_HEADS
    qh = q.reshape(B, NUM_HEADS, hd)
    kh = k.reshape(B, NUM_HEADS, hd)
    vh = v.reshape(B, NUM_HEADS, hd)

    s = jnp.einsum("bhd,bhd->bh", qh, kh, precision=hi) / jnp.sqrt(hd)
    wgt = jax.nn.softmax(s[..., None], axis=-1)      # single key -> exactly 1.0
    attn = (wgt * vh).reshape(B, D)

    o = jnp.dot(attn, p["w_o"], precision=hi) + p["b_o"]
    return jnp.dot(o, p["w_fc"], precision=hi) + p["b_fc"]


# --------------------------------------------------------------------------- #
if __name__ == "__main__":
    B, D, H = 8, 128, 128          # small shapes; D divisible by num_heads=8

    key = jax.random.PRNGKey(0)
    k_gene, k_kg, k_params = jax.random.split(key, 3)
    gene = jax.random.normal(k_gene, (B, D), dtype=jnp.float32)
    kg = jax.random.normal(k_kg, (B, D), dtype=jnp.float32)
    params = init_params(k_params, D, H)

    ref = reference_forward(gene, kg, params)

    # f32 compute path: near-exact (only the offline W_v/W_o/W_fc fold
    # reassociation differs from the reference).
    out_f32 = fuse_forward(gene, kg, fold_params(params, jnp.float32),
                           out_dtype=jnp.float32)
    out_f32 = jax.block_until_ready(out_f32)
    assert out_f32.shape == (B, H)
    err_f32 = float(jnp.max(jnp.abs(out_f32 - ref)))
    assert jnp.allclose(out_f32, ref, atol=2e-4, rtol=2e-3), err_f32

    # bf16 compute path (recommended on v6e/v7x): bf16 MXU inputs, f32 accum,
    # bf16 output writeback.
    out_bf16 = fuse_forward(gene, kg, fold_params(params, jnp.bfloat16),
                            out_dtype=jnp.bfloat16)
    out_bf16 = jax.block_until_ready(out_bf16)
    assert out_bf16.shape == (B, H)
    err_bf16 = float(jnp.max(jnp.abs(out_bf16.astype(jnp.float32) - ref)))
    assert jnp.allclose(out_bf16.astype(jnp.float32), ref,
                        atol=5e-3, rtol=5e-2), err_bf16

    print("KERNEL_OK")
</pallas_src>

<mosaic_0001>
module attributes {stable_mosaic.version = 11 : i64} {
  func.func @fuse_kernel(%arg0: i32, %arg1: i32, %arg2: memref<8x128xf32, #tpu.memory_space<vmem>>, %arg3: memref<128x128xf32, #tpu.memory_space<vmem>>, %arg4: memref<1x128xf32, #tpu.memory_space<vmem>>, %arg5: memref<8x128xf32, #tpu.memory_space<vmem>>) attributes {dimension_semantics = [#tpu.dimension_semantics<parallel>, #tpu.dimension_semantics<parallel>], iteration_bounds = array<i64: 1, 1>, scalar_prefetch = 0 : i64, scratch_operands = 0 : i64, tpu.core_type = #tpu.core_type<tc>, window_params = [{transform_indices = @transform_0, window_bounds = array<i64: 8, 128>}, {transform_indices = @transform_1, window_bounds = array<i64: 128, 128>}, {transform_indices = @transform_2, window_bounds = array<i64: 1, 128>}, {transform_indices = @transform_3, window_bounds = array<i64: 8, 128>}]} {
    %c0 = arith.constant 0 : index
    %c0_0 = arith.constant 0 : index
    %0 = vector.load %arg2[%c0, %c0_0] : memref<8x128xf32, #tpu.memory_space<vmem>>, vector<8x128xf32>
    %c0_1 = arith.constant 0 : index
    %c0_2 = arith.constant 0 : index
    %1 = vector.load %arg3[%c0_1, %c0_2] : memref<128x128xf32, #tpu.memory_space<vmem>>, vector<128x128xf32>
    %cst = arith.constant dense<0.000000e+00> : vector<8x128xf32>
    %2 = tpu.matmul %0, %1, %cst {dimension_numbers = #tpu.dot_dimension_numbers<[1], [0], [0], [1], [0, 0, 1, 1], [], []>} : vector<8x128xf32>, vector<128x128xf32>, vector<8x128xf32> -> vector<8x128xf32>
    %c0_3 = arith.constant 0 : index
    %c0_4 = arith.constant 0 : index
    %3 = vector.load %arg4[%c0_3, %c0_4] : memref<1x128xf32, #tpu.memory_space<vmem>>, vector<1x128xf32>
    %4 = vector.broadcast %3 : vector<1x128xf32> to vector<8x128xf32>
    %5 = arith.addf %2, %4 : vector<8x128xf32>
    %c0_5 = arith.constant 0 : index
    %c0_6 = arith.constant 0 : index
    %6 = vector.load %arg5[%c0_5, %c0_6] : memref<8x128xf32, #tpu.memory_space<vmem>>, vector<8x128xf32>
    tpu.vector_store %arg5[%c0_5, %c0_6], %5 {strides = array<i32>} : memref<8x128xf32, #tpu.memory_space<vmem>>, vector<8x128xf32>,
    return
  }
  func.func @transform_0(%arg0: i32, %arg1: i32) -> (i32, i32) {
    %c0_i32 = arith.constant 0 : i32
    %c0_i32_0 = arith.constant 0 : i32
    return %arg0, %c0_i32 : i32, i32
  }
  func.func @transform_1(%arg0: i32, %arg1: i32) -> (i32, i32) {
    %c0_i32 = arith.constant 0 : i32
    %c0_i32_0 = arith.constant 0 : i32
    return %c0_i32, %arg1 : i32, i32
  }
  func.func @transform_2(%arg0: i32, %arg1: i32) -> (i32, i32) {
    %c0_i32 = arith.constant 0 : i32
    %c0_i32_0 = arith.constant 0 : i32
    return %c0_i32, %arg1 : i32, i32
  }
  func.func @transform_3(%arg0: i32, %arg1: i32) -> (i32, i32) {
    %c0_i32 = arith.constant 0 : i32
    return %arg0, %arg1 : i32, i32
  }
}

</mosaic_0001>

<bundles_post_ra>
// kernel: tpu_custom_call.1
= control target key start
LH: loop header
LB: loop body
LE: loop exit
PB: predicated region body
PF: predicated region fallthrough
CT: control target
= control target key end

     0   :  { %8 = vsyncpa [#allocation3], 0  ;;  %s383_s0 = inlined_call_operand.hbm [shape: f32[8,128], index: 0, kind: input, shape index: {}]   ;;  %s384_s1 = inlined_call_operand.hbm [shape: f32[128,128], index: 1, kind: input, shape index: {}]   ;;  %s385_s2 = inlined_call_operand.vmem [shape: f32[1,128], index: 2, kind: input, shape index: {}]   ;;  %s386_s3 = inlined_call_operand.hbm [shape: f32[8,128], index: 3, kind: output, shape index: {}]  }
   0x1   :  { %9 = vsyncpa [#allocation6], 0 }
   0x2   :  { %10 = vsyncpa [#allocation4], 0  ;;  %s309_s12 = smov [#allocation2]   ;;  %s310_s14 = smov [#allocation5]  }
   0x3   :  { %s17_s13 = sshll.u32 %s309_s12, 4  ;;  %s26_s15 = sshll.u32 %s310_s14, 4  ;;  %s18_s13 = int_to_ptr.vmem [resolvable:$true] %s17_s13  ;;  %s337_s15 = int_to_ptr.vmem [resolvable:$true] %s26_s15 }
   0x4   :  { %s237_s18 = scalar_lea.hbm %s383_s0, 128 }
   0x5   :  { %p238_p0 = scmp.ne.s32.totalorder %s383_s0, %s237_s18  ;;  %p241_p1 = scmp.lt.u32.totalorder %s237_s18, %s383_s0 }
   0x7   :  { %p243_p2 = pnand %p241_p1, %p238_p0 }
   0x9   :  { %246 = shalt.err (!%p243_p2)
}
   0xa   :  { %s247_s23 = scalar_lea.vmem %s18_s13, 128  ;;  %p252_p4 = scmp.lt.s32.totalorder %s18_s13, %s18_s13 }
   0xb   :  { %p248_p3 = scmp.ne.s32.totalorder %s18_s13, %s247_s23  ;;  %p253_p5 = scmp.lt.s32.totalorder %s247_s23, %s247_s23 }
   0xd   :  { %p254_p6 = por %p253_p5, %p252_p4 }
   0xf   :  { %p255_p7 = pnand %p254_p6, %p248_p3 }
  0x11   :  { %258 = shalt.err (!%p255_p7)
}
  0x12   :  { %20 = dma.hbm_to_vmem [thread:$0]  %s383_s0, 128, %s18_s13, [#allocation3]  }
  0x13   :  { %s259_s28 = scalar_lea.hbm %s384_s1, 2048 }
  0x14   :  { %p260_p8 = scmp.ne.s32.totalorder %s384_s1, %s259_s28  ;;  %p263_p9 = scmp.lt.u32.totalorder %s259_s28, %s384_s1 }
  0x16   :  { %p265_p10 = pnand %p263_p9, %p260_p8 }
  0x18   :  { %268 = shalt.err (!%p265_p10)
}
  0x19   :  { %s269_s6 = scalar_lea.vmem %s337_s15, 2048  ;;  %p274_p12 = scmp.lt.s32.totalorder %s337_s15, %s337_s15 }
  0x1a   :  { %p270_p11 = scmp.ne.s32.totalorder %s337_s15, %s269_s6  ;;  %p275_p13 = scmp.lt.s32.totalorder %s269_s6, %s269_s6 }
  0x1c   :  { %p276_p0 = por %p275_p13, %p274_p12 }
  0x1e   :  { %p277_p1 = pnand %p276_p0, %p270_p11 }
  0x20   :  { %280 = shalt.err (!%p277_p1)
}
  0x21   :  { %s311_s0 = smov 128   ;;  %s312_s7 = smov 8  }
  0x22   :  { %32 = dma.hbm_to_vmem [thread:$0]  %s384_s1, 2048, %s337_s15, [#allocation6], %s311_s0, %s311_s0, %s312_s7  }
  0x23   :  { %303 = dma.done.wait [#allocation3], 128  }
  0x24   :  { %304 = vsyncadd [#allocation3], 4294967168 }
  0x25   :  { %305 = dma.done.wait [#allocation6], 2048  }
  0x26   :  { %306 = vsyncadd [#allocation6], 4294965248  ;;  %v313_v0 = vmov 0.0|0.0   ;;  %vm314_vm0 = vmmov 0   ;;  %v315_v1 = vmov 0.0   ;;  %v42_v2 = vld [vmem:[#allocation5] sm:$0xff] }
  0x27   :  { %205 = vmatprep.subr.bf16.mxu0 %v313_v0  ;;  %202 = vmatprep.mubr.msk.f32.mxu0 %vm314_vm0, %v315_v1  ;;  %v43_v3 = vld [vmem:[#allocation5 + $0x8] sm:$0xff]  ;;  %v44_v4 = vld [vmem:[#allocation5 + $0x10] sm:$0xff]  ;;  %v45_v6 = vld [vmem:[#allocation5 + $0x18] sm:$0xff]  ;;  %s316_s11 = smov [#allocation7]  }
  0x28   :  { %v206_v5 = vpack.c.bf16 %v43_v3, %v42_v2  ;;  %v209_v7 = vpack.c.bf16 %v45_v6, %v44_v4  ;;  %v46_v8 = vld [vmem:[#allocation5 + $0x20] sm:$0xff]  ;;  %v47_v9 = vld [vmem:[#allocation5 + $0x28] sm:$0xff]  ;;  %v48_v11 = vld [vmem:[#allocation5 + $0x30] sm:$0xff]  ;;  %s142_s12 = sshll.u32 %s316_s11, 4  ;;  %s143_s12 = int_to_ptr.vmem [resolvable:$true] %s142_s12 }
  0x29   :  { %v212_v10 = vpack.c.bf16 %v47_v9, %v46_v8  ;;  %v49_v12 = vld [vmem:[#allocation5 + $0x38] sm:$0xff]  ;;  %v50_v14 = vld [vmem:[#allocation5 + $0x40] sm:$0xff]  ;;  %v51_v15 = vld [vmem:[#allocation5 + $0x48] sm:$0xff]  ;;  %s281_s13 = scalar_lea.vmem %s143_s12, 128  ;;  %p286_p3 = scmp.lt.s32.totalorder %s143_s12, %s143_s12 }
  0x2a   :  { %207 = vmatpush3.bf16.msra.mxu0 %v206_v5  ;;  %v215_v13 = vpack.c.bf16 %v49_v12, %v48_v11  ;;  %v218_v16 = vpack.c.bf16 %v51_v15, %v50_v14  ;;  %v52_v17 = vld [vmem:[#allocation5 + $0x50] sm:$0xff]  ;;  %v53_v18 = vld [vmem:[#allocation5 + $0x58] sm:$0xff]  ;;  %v54_v20 = vld [vmem:[#allocation5 + $0x60] sm:$0xff]  ;;  %p282_p2 = scmp.ne.s32.totalorder %s143_s12, %s281_s13  ;;  %p287_p4 = scmp.lt.s32.totalorder %s281_s13, %s281_s13 }
  0x2b   :  { %208 = vmatprep.subr.bf16.mxu0 %v313_v0  ;;  %v221_v19 = vpack.c.bf16 %v53_v18, %v52_v17  ;;  %v55_v21 = vld [vmem:[#allocation5 + $0x68] sm:$0xff]  ;;  %v56_v23 = vld [vmem:[#allocation5 + $0x70] sm:$0xff]  ;;  %v57_v24 = vld [vmem:[#allocation5 + $0x78] sm:$0xff] }
  0x2c   :  { %v224_v22 = vpack.c.bf16 %v55_v21, %v54_v20  ;;  %v227_v25 = vpack.c.bf16 %v57_v24, %v56_v23  ;;  %v41_v26 = vld [vmem:[#allocation2] sm:$0xff]  ;;  %p288_p5 = por %p287_p4, %p286_p3 }
  0x2d   :  { %v152_v27 = vld [vmem:[%s385_s2] ss:$0 sm:$0xff] }
  0x2e   :  { %210 = vmatpush3.bf16.msra.mxu0 %v209_v7  ;;  %p289_p6 = pnand %p288_p5, %p282_p2 }
  0x2f   :  { %211 = vmatprep.subr.bf16.mxu0 %v313_v0 }
  0x32   :  { %213 = vmatpush3.bf16.msra.mxu0 %v212_v10 }
  0x33   :  { %214 = vmatprep.subr.bf16.mxu0 %v313_v0 }
  0x36   :  { %216 = vmatpush3.bf16.msra.mxu0 %v215_v13 }
  0x37   :  { %217 = vmatprep.subr.bf16.mxu0 %v313_v0 }
  0x3a   :  { %219 = vmatpush3.bf16.msra.mxu0 %v218_v16 }
  0x3b   :  { %220 = vmatprep.subr.bf16.mxu0 %v313_v0 }
  0x3e   :  { %222 = vmatpush3.bf16.msra.mxu0 %v221_v19 }
  0x3f   :  { %223 = vmatprep.subr.bf16.mxu0 %v313_v0 }
  0x42   :  { %225 = vmatpush3.bf16.msra.mxu0 %v224_v22 }
  0x43   :  { %226 = vmatprep.subr.bf16.mxu0 %v313_v0 }
  0x46   :  { %228 = vmatpush3.bf16.msra.mxu0 %v227_v25 }
  0x49   :  { %203 = vmatmul.mubr.f32.vlgmr.msra.gmra.mrb[0].mxu0 %v41_v26 }
 0x11c   :  { %v131_v28 = vpop.f32.mrb[0].mxu0 }
 0x11d   :  { %v132_v29 = vadd.f32 %v152_v27, %v131_v28  ;;  %v204_v30 = vpop.f32.mrb[1].mxu0 }
 0x11f   :  { %135 = vst [vmem:[#allocation7] sm:$0xff] %v132_v29 }
 0x120   :  { %292 = shalt.err (!%p289_p6)
}
 0x121   :  { %s293_s16 = scalar_lea.hbm %s386_s3, 128 }
 0x122   :  { %p294_p7 = scmp.ne.s32.totalorder %s386_s3, %s293_s16  ;;  %p297_p8 = scmp.lt.u32.totalorder %s293_s16, %s386_s3 }
 0x124   :  { %p299_p9 = pnand %p297_p8, %p294_p7 }
 0x126   :  { %302 = shalt.err (!%p299_p9)
}
 0x127   :  { %145 = dma.vmem_to_hbm [thread:$0]  %s143_s12, 128, %s386_s3, [#allocation4]  }
 0x128   :  { %307 = dma.done.wait [#allocation4], 128  }
 0x129   :  { %308 = vsyncadd [#allocation4], 4294967168 }
 0x12a   :  { %149 = vsyncpa [#allocation3], 1 }
 0x12b   :  { %150 = vsyncpa [#allocation6], 1 }
 0x12c   :  { %151 = vsyncpa [#allocation4], 1 }

</bundles_post_ra>
